<compile_context>
chip_gen: v7x
topology: tpu7x:2x2x1
jax: 0.10.0
libtpu: 0.0.40
codegen_flags: <defaults>
</compile_context>

<pallas_src>
import functools
import math

import jax
import jax.numpy as jnp
from jax import lax
from jax.experimental import pallas as pl
from jax.experimental.pallas import tpu as pltpu


def _round_up(n, m):
    return ((n + m - 1) // m) * m


def _default_vmem_limit_bytes():
    """Chip-aware scoped-VMEM cap: ~48 MiB on v7x (64 MiB VMEM), ~96 MiB on v5e/v6e."""
    try:
        cap = int(getattr(pltpu.get_tpu_info(), "vmem_capacity_bytes", 128 << 20))
    except Exception:  # pragma: no cover - conservative fallback
        cap = 128 << 20
    return min((cap * 3) // 4, 100 * 1024 * 1024)


# ----------------------------- kernel 1: QKV projection ----------------------

def _qkv_proj_kernel(x_ref, wq_ref, bq_ref, wk_ref, bk_ref, wv_ref, bv_ref,
                     q_ref, k_ref, v_ref, *, scale, mxu_dtype):
    """Project one (Tm, Din) row tile to Q/K/V once (hoisted out of the KV loop)."""
    x = x_ref[...].astype(mxu_dtype)              # bf16 MXU operand, f32 accumulation
    q = jnp.dot(x, wq_ref[...], preferred_element_type=jnp.float32) + bq_ref[...]
    k = jnp.dot(x, wk_ref[...], preferred_element_type=jnp.float32) + bk_ref[...]
    v = jnp.dot(x, wv_ref[...], preferred_element_type=jnp.float32) + bv_ref[...]
    q_ref[...] = (q * scale).astype(q_ref.dtype)  # fold 1/sqrt(dim_k) into Q
    k_ref[...] = k.astype(k_ref.dtype)
    v_ref[...] = v.astype(v_ref.dtype)


# ----------------------------- kernel 2: flash attention ---------------------

def _flash_attn_kernel(q_ref, k_ref, v_ref, o_ref, m_sc, l_sc, acc_sc,
                       *, mxu_dtype, softmax_dtype):
    """One (batch, q-tile, kv-tile) step of online-softmax attention."""
    ki = pl.program_id(2)

    @pl.when(ki == 0)
    def _init():
        m_sc[...] = jnp.full_like(m_sc, -jnp.inf)
        l_sc[...] = jnp.zeros_like(l_sc)
        acc_sc[...] = jnp.zeros_like(acc_sc)

    # Scores: contract the head dims directly (no explicit k.T transpose).
    s = lax.dot_general(q_ref[...], k_ref[...],
                        dimension_numbers=(((1,), (1,)), ((), ())),
                        preferred_element_type=jnp.float32)          # (Tq, Tk) f32

    # Online-softmax update (flash attention). Stats stay in f32; the big exp /
    # p tile can be dropped to bf16 on v6e/v7x via softmax_dtype (keep f32 on v5e).
    m_prev = m_sc[...]
    m_new = jnp.maximum(m_prev, jnp.max(s, axis=-1, keepdims=True))
    alpha = jnp.exp(m_prev - m_new)
    p = jnp.exp((s - m_new).astype(softmax_dtype))
    l_sc[...] = alpha * l_sc[...] + jnp.sum(p.astype(jnp.float32), axis=-1,
                                            keepdims=True)
    acc_sc[...] = alpha * acc_sc[...] + jnp.dot(
        p.astype(mxu_dtype), v_ref[...].astype(mxu_dtype),
        preferred_element_type=jnp.float32)
    m_sc[...] = m_new

    @pl.when(ki == pl.num_programs(2) - 1)
    def _finalize():
        # Exact divide: runs once per query tile, off the critical path.
        o_ref[...] = (acc_sc[...] / l_sc[...]).astype(o_ref.dtype)


# ----------------------------- wrapper ---------------------------------------

def self_attention_head(x, wq, bq, wk, bk, wv, bv, *,
                        block_q=256, block_k=128, block_x=256,
                        mxu_dtype=jnp.bfloat16, softmax_dtype=jnp.float32,
                        vmem_limit_bytes=None):
    """x: (B, S, dim_in); w*: (dim_in, dim_k); b*: (dim_k,). Returns (B, S, dim_k)."""
    B, S, Din = x.shape
    Dk = wq.shape[1]
    Dkp = _round_up(Dk, 128)       # lane-dense q/k/v/out (no masked vst for Dk < 128)

    tq = min(block_q, S)
    tk = min(block_k, S)
    tx = min(block_x, S)
    for name, t in (("block_q", tq), ("block_k", tk), ("block_x", tx)):
        if S % t:
            raise ValueError(f"S={S} must be divisible by {name}={t}")
        if t != S and t % 8:
            raise ValueError(f"{name}={t} must be a multiple of 8 (or equal S)")

    if vmem_limit_bytes is None:
        vmem_limit_bytes = _default_vmem_limit_bytes()

    # Zero-pad the head dim to a 128-lane multiple. Padded q/k columns add 0 to
    # every score and padded v columns stay exactly 0, so the result is exact.
    if Dkp != Dk:
        pad_w = lambda w: jnp.pad(w, ((0, 0), (0, Dkp - Dk)))
        pad_b = lambda b: jnp.pad(b, (0, Dkp - Dk))
        wq, wk, wv = pad_w(wq), pad_w(wk), pad_w(wv)
        bq, bk, bv = pad_b(bq), pad_b(bk), pad_b(bv)
    wq, wk, wv = (w.astype(mxu_dtype) for w in (wq, wk, wv))   # MXU operand dtype
    bq, bk, bv = (b.reshape(1, Dkp).astype(jnp.float32) for b in (bq, bk, bv))

    sq = pl.Squeezed()
    # Weight/bias blocks are grid-invariant. They only appear in the cheap
    # projection kernel (the flash loop carries no weights), so their default
    # double-buffer cost is negligible even under v7x's 64 MiB VMEM.
    w_spec = pl.BlockSpec((Din, Dkp), lambda b, i: (0, 0))
    b_spec = pl.BlockSpec((1, Dkp), lambda b, i: (0, 0))

    scale = 1.0 / math.sqrt(Dk)    # use the *unpadded* head dim

    # ---- 1) QKV projection: once per row tile (hoisted out of the KV loop). --
    q, k, v = pl.pallas_call(
        functools.partial(_qkv_proj_kernel, scale=scale, mxu_dtype=mxu_dtype),
        out_shape=[jax.ShapeDtypeStruct((B, S, Dkp), mxu_dtype)] * 3,
        grid_spec=pltpu.PrefetchScalarGridSpec(
            num_scalar_prefetch=0,
            grid=(B, S // tx),
            in_specs=[
                pl.BlockSpec((sq, tx, Din), lambda b, i: (b, i, 0)),   # x rows
                w_spec, b_spec,    # Wq, bq
                w_spec, b_spec,    # Wk, bk
                w_spec, b_spec,    # Wv, bv
            ],
            out_specs=[pl.BlockSpec((sq, tx, Dkp), lambda b, i: (b, i, 0))] * 3,
        ),
        compiler_params=pltpu.CompilerParams(
            dimension_semantics=("parallel", "parallel"),
            vmem_limit_bytes=vmem_limit_bytes),
    )(x, wq, bq, wk, bk, wv, bv)

    # ---- 2) Flash attention over projected bf16 tiles. -----------------------
    nq, nk = S // tq, S // tk
    out = pl.pallas_call(
        functools.partial(_flash_attn_kernel, mxu_dtype=mxu_dtype,
                          softmax_dtype=softmax_dtype),
        out_shape=jax.ShapeDtypeStruct((B, S, Dkp), x.dtype),
        grid_spec=pltpu.PrefetchScalarGridSpec(
            num_scalar_prefetch=0,
            grid=(B, nq, nk),
            in_specs=[
                pl.BlockSpec((sq, tq, Dkp), lambda b, qi, ki: (b, qi, 0)),  # Q tile
                pl.BlockSpec((sq, tk, Dkp), lambda b, qi, ki: (b, ki, 0)),  # K tile
                pl.BlockSpec((sq, tk, Dkp), lambda b, qi, ki: (b, ki, 0)),  # V tile
            ],
            out_specs=pl.BlockSpec((sq, tq, Dkp), lambda b, qi, ki: (b, qi, 0)),
            scratch_shapes=[
                pltpu.VMEM((tq, 1), jnp.float32),     # running max
                pltpu.VMEM((tq, 1), jnp.float32),     # running sum
                pltpu.VMEM((tq, Dkp), jnp.float32),   # output accumulator
            ],
        ),
        compiler_params=pltpu.CompilerParams(
            # B and q-tile axes are independent (v7x's two TCs can split them;
            # keep B*nq >= 2 and even for full megacore occupancy); the KV axis
            # carries the online-softmax state.
            dimension_semantics=("parallel", "parallel", "arbitrary"),
            vmem_limit_bytes=vmem_limit_bytes),
    )(q, k, v)

    return out[..., :Dk] if Dkp != Dk else out


def _reference(x, wq, bq, wk, bk, wv, bv):
    q = x @ wq + bq
    k = x @ wk + bk
    v = x @ wv + bv
    s = jnp.einsum("bqd,bkd->bqk", q, k) / jnp.sqrt(jnp.float32(q.shape[-1]))
    a = jax.nn.softmax(s, axis=-1)
    return jnp.einsum("bqk,bkd->bqd", a, v)


if __name__ == "__main__":
    B, S, DIM_IN, DIM_K = 2, 128, 32, 32
    BLOCK_Q, BLOCK_K, BLOCK_X = 64, 64, 64   # exercises online softmax over 2x2 seq tiles

    key = jax.random.PRNGKey(0)
    kx, kq, kbq, kk, kbk, kv, kbv = jax.random.split(key, 7)

    # deterministic "Linear"-like init (uniform in +-1/sqrt(dim_in))
    bound = 1.0 / (DIM_IN ** 0.5)
    x = jax.random.normal(kx, (B, S, DIM_IN), dtype=jnp.float32)
    wq = jax.random.uniform(kq, (DIM_IN, DIM_K), jnp.float32, -bound, bound)
    bq = jax.random.uniform(kbq, (DIM_K,), jnp.float32, -bound, bound)
    wk = jax.random.uniform(kk, (DIM_IN, DIM_K), jnp.float32, -bound, bound)
    bk = jax.random.uniform(kbk, (DIM_K,), jnp.float32, -bound, bound)
    wv = jax.random.uniform(kv, (DIM_IN, DIM_K), jnp.float32, -bound, bound)
    bv = jax.random.uniform(kbv, (DIM_K,), jnp.float32, -bound, bound)

    out = self_attention_head(x, wq, bq, wk, bk, wv, bv,
                              block_q=BLOCK_Q, block_k=BLOCK_K, block_x=BLOCK_X)
    out = jax.block_until_ready(out)

    ref = _reference(x, wq, bq, wk, bk, wv, bv)
    assert out.shape == (B, S, DIM_K)
    # Tolerance accounts for bf16 MXU operands / bf16 q,k,v intermediates
    # (f32 accumulation everywhere; softmax stats and normalization are exact f32).
    assert jnp.allclose(out, ref, atol=2e-2, rtol=2e-2), "mismatch vs reference"

    print("KERNEL_OK")
</pallas_src>

<mosaic_0001>
module attributes {stable_mosaic.version = 11 : i64} {
  func.func @_qkv_proj_kernel(%arg0: i32, %arg1: i32, %arg2: memref<1x64x32xf32, #tpu.memory_space<vmem>>, %arg3: memref<32x128xbf16, #tpu.memory_space<vmem>>, %arg4: memref<1x128xf32, #tpu.memory_space<vmem>>, %arg5: memref<32x128xbf16, #tpu.memory_space<vmem>>, %arg6: memref<1x128xf32, #tpu.memory_space<vmem>>, %arg7: memref<32x128xbf16, #tpu.memory_space<vmem>>, %arg8: memref<1x128xf32, #tpu.memory_space<vmem>>, %arg9: memref<1x64x128xbf16, #tpu.memory_space<vmem>>, %arg10: memref<1x64x128xbf16, #tpu.memory_space<vmem>>, %arg11: memref<1x64x128xbf16, #tpu.memory_space<vmem>>) attributes {dimension_semantics = [#tpu.dimension_semantics<parallel>, #tpu.dimension_semantics<parallel>], iteration_bounds = array<i64: 2, 2>, scalar_prefetch = 0 : i64, scratch_operands = 0 : i64, tpu.core_type = #tpu.core_type<tc>, window_params = [{transform_indices = @transform_0, window_bounds = array<i64: 1, 64, 32>}, {pipeline_mode = #tpu.pipeline_mode<synchronous>, transform_indices = @transform_1, window_bounds = array<i64: 32, 128>}, {pipeline_mode = #tpu.pipeline_mode<synchronous>, transform_indices = @transform_2, window_bounds = array<i64: 1, 128>}, {pipeline_mode = #tpu.pipeline_mode<synchronous>, transform_indices = @transform_3, window_bounds = array<i64: 32, 128>}, {pipeline_mode = #tpu.pipeline_mode<synchronous>, transform_indices = @transform_4, window_bounds = array<i64: 1, 128>}, {pipeline_mode = #tpu.pipeline_mode<synchronous>, transform_indices = @transform_5, window_bounds = array<i64: 32, 128>}, {pipeline_mode = #tpu.pipeline_mode<synchronous>, transform_indices = @transform_6, window_bounds = array<i64: 1, 128>}, {transform_indices = @transform_7, window_bounds = array<i64: 1, 64, 128>}, {transform_indices = @transform_8, window_bounds = array<i64: 1, 64, 128>}, {transform_indices = @transform_9, window_bounds = array<i64: 1, 64, 128>}]} {
    %c0 = arith.constant 0 : index
    %c0_0 = arith.constant 0 : index
    %c0_1 = arith.constant 0 : index
    %0 = vector.load %arg2[%c0, %c0_0, %c0_1] : memref<1x64x32xf32, #tpu.memory_space<vmem>>, vector<1x64x32xf32>
    %1 = vector.shape_cast %0 : vector<1x64x32xf32> to vector<64x32xf32>
    %2 = arith.truncf %1 : vector<64x32xf32> to vector<64x32xbf16>
    %c0_2 = arith.constant 0 : index
    %c0_3 = arith.constant 0 : index
    %3 = vector.load %arg3[%c0_2, %c0_3] : memref<32x128xbf16, #tpu.memory_space<vmem>>, vector<32x128xbf16>
    %cst = arith.constant dense<0.000000e+00> : vector<64x128xf32>
    %4 = tpu.matmul %2, %3, %cst {dimension_numbers = #tpu.dot_dimension_numbers<[1], [0], [0], [1], [0, 0, 1, 1], [], []>} : vector<64x32xbf16>, vector<32x128xbf16>, vector<64x128xf32> -> vector<64x128xf32>
    %c0_4 = arith.constant 0 : index
    %c0_5 = arith.constant 0 : index
    %5 = vector.load %arg4[%c0_4, %c0_5] : memref<1x128xf32, #tpu.memory_space<vmem>>, vector<1x128xf32>
    %6 = vector.broadcast %5 : vector<1x128xf32> to vector<64x128xf32>
    %7 = arith.addf %4, %6 : vector<64x128xf32>
    %c0_6 = arith.constant 0 : index
    %c0_7 = arith.constant 0 : index
    %8 = vector.load %arg5[%c0_6, %c0_7] : memref<32x128xbf16, #tpu.memory_space<vmem>>, vector<32x128xbf16>
    %cst_8 = arith.constant dense<0.000000e+00> : vector<64x128xf32>
    %9 = tpu.matmul %2, %8, %cst_8 {dimension_numbers = #tpu.dot_dimension_numbers<[1], [0], [0], [1], [0, 0, 1, 1], [], []>} : vector<64x32xbf16>, vector<32x128xbf16>, vector<64x128xf32> -> vector<64x128xf32>
    %c0_9 = arith.constant 0 : index
    %c0_10 = arith.constant 0 : index
    %10 = vector.load %arg6[%c0_9, %c0_10] : memref<1x128xf32, #tpu.memory_space<vmem>>, vector<1x128xf32>
    %11 = vector.broadcast %10 : vector<1x128xf32> to vector<64x128xf32>
    %12 = arith.addf %9, %11 : vector<64x128xf32>
    %c0_11 = arith.constant 0 : index
    %c0_12 = arith.constant 0 : index
    %13 = vector.load %arg7[%c0_11, %c0_12] : memref<32x128xbf16, #tpu.memory_space<vmem>>, vector<32x128xbf16>
    %cst_13 = arith.constant dense<0.000000e+00> : vector<64x128xf32>
    %14 = tpu.matmul %2, %13, %cst_13 {dimension_numbers = #tpu.dot_dimension_numbers<[1], [0], [0], [1], [0, 0, 1, 1], [], []>} : vector<64x32xbf16>, vector<32x128xbf16>, vector<64x128xf32> -> vector<64x128xf32>
    %c0_14 = arith.constant 0 : index
    %c0_15 = arith.constant 0 : index
    %15 = vector.load %arg8[%c0_14, %c0_15] : memref<1x128xf32, #tpu.memory_space<vmem>>, vector<1x128xf32>
    %16 = vector.broadcast %15 : vector<1x128xf32> to vector<64x128xf32>
    %17 = arith.addf %14, %16 : vector<64x128xf32>
    %cst_16 = arith.constant 0.176776692 : f32
    %18 = vector.broadcast %cst_16 : f32 to vector<64x128xf32>
    %19 = arith.mulf %7, %18 : vector<64x128xf32>
    %20 = arith.truncf %19 : vector<64x128xf32> to vector<64x128xbf16>
    %c0_17 = arith.constant 0 : index
    %c0_18 = arith.constant 0 : index
    %c0_19 = arith.constant 0 : index
    %21 = vector.load %arg9[%c0_17, %c0_18, %c0_19] : memref<1x64x128xbf16, #tpu.memory_space<vmem>>, vector<1x64x128xbf16>
    %22 = vector.shape_cast %21 : vector<1x64x128xbf16> to vector<64x128xbf16>
    %23 = vector.shape_cast %20 : vector<64x128xbf16> to vector<1x64x128xbf16>
    tpu.vector_store %arg9[%c0_17, %c0_18, %c0_19], %23 {strides = array<i32>} : memref<1x64x128xbf16, #tpu.memory_space<vmem>>, vector<1x64x128xbf16>,
    %24 = arith.truncf %12 : vector<64x128xf32> to vector<64x128xbf16>
    %c0_20 = arith.constant 0 : index
    %c0_21 = arith.constant 0 : index
    %c0_22 = arith.constant 0 : index
    %25 = vector.load %arg10[%c0_20, %c0_21, %c0_22] : memref<1x64x128xbf16, #tpu.memory_space<vmem>>, vector<1x64x128xbf16>
    %26 = vector.shape_cast %25 : vector<1x64x128xbf16> to vector<64x128xbf16>
    %27 = vector.shape_cast %24 : vector<64x128xbf16> to vector<1x64x128xbf16>
    tpu.vector_store %arg10[%c0_20, %c0_21, %c0_22], %27 {strides = array<i32>} : memref<1x64x128xbf16, #tpu.memory_space<vmem>>, vector<1x64x128xbf16>,
    %28 = arith.truncf %17 : vector<64x128xf32> to vector<64x128xbf16>
    %c0_23 = arith.constant 0 : index
    %c0_24 = arith.constant 0 : index
    %c0_25 = arith.constant 0 : index
    %29 = vector.load %arg11[%c0_23, %c0_24, %c0_25] : memref<1x64x128xbf16, #tpu.memory_space<vmem>>, vector<1x64x128xbf16>
    %30 = vector.shape_cast %29 : vector<1x64x128xbf16> to vector<64x128xbf16>
    %31 = vector.shape_cast %28 : vector<64x128xbf16> to vector<1x64x128xbf16>
    tpu.vector_store %arg11[%c0_23, %c0_24, %c0_25], %31 {strides = array<i32>} : memref<1x64x128xbf16, #tpu.memory_space<vmem>>, vector<1x64x128xbf16>,
    return
  }
  func.func @transform_0(%arg0: i32, %arg1: i32) -> (i32, i32, i32) {
    %c0_i32 = arith.constant 0 : i32
    %c0_i32_0 = arith.constant 0 : i32
    return %arg0, %arg1, %c0_i32 : i32, i32, i32
  }
  func.func @transform_1(%arg0: i32, %arg1: i32) -> (i32, i32) {
    %c0_i32 = arith.constant 0 : i32
    %c0_i32_0 = arith.constant 0 : i32
    %c0_i32_1 = arith.constant 0 : i32
    return %c0_i32, %c0_i32_0 : i32, i32
  }
  func.func @transform_2(%arg0: i32, %arg1: i32) -> (i32, i32) {
    %c0_i32 = arith.constant 0 : i32
    %c0_i32_0 = arith.constant 0 : i32
    %c0_i32_1 = arith.constant 0 : i32
    return %c0_i32, %c0_i32_0 : i32, i32
  }
  func.func @transform_3(%arg0: i32, %arg1: i32) -> (i32, i32) {
    %c0_i32 = arith.constant 0 : i32
    %c0_i32_0 = arith.constant 0 : i32
    %c0_i32_1 = arith.constant 0 : i32
    return %c0_i32, %c0_i32_0 : i32, i32
  }
  func.func @transform_4(%arg0: i32, %arg1: i32) -> (i32, i32) {
    %c0_i32 = arith.constant 0 : i32
    %c0_i32_0 = arith.constant 0 : i32
    %c0_i32_1 = arith.constant 0 : i32
    return %c0_i32, %c0_i32_0 : i32, i32
  }
  func.func @transform_5(%arg0: i32, %arg1: i32) -> (i32, i32) {
    %c0_i32 = arith.constant 0 : i32
    %c0_i32_0 = arith.constant 0 : i32
    %c0_i32_1 = arith.constant 0 : i32
    return %c0_i32, %c0_i32_0 : i32, i32
  }
  func.func @transform_6(%arg0: i32, %arg1: i32) -> (i32, i32) {
    %c0_i32 = arith.constant 0 : i32
    %c0_i32_0 = arith.constant 0 : i32
    %c0_i32_1 = arith.constant 0 : i32
    return %c0_i32, %c0_i32_0 : i32, i32
  }
  func.func @transform_7(%arg0: i32, %arg1: i32) -> (i32, i32, i32) {
    %c0_i32 = arith.constant 0 : i32
    %c0_i32_0 = arith.constant 0 : i32
    return %arg0, %arg1, %c0_i32 : i32, i32, i32
  }
  func.func @transform_8(%arg0: i32, %arg1: i32) -> (i32, i32, i32) {
    %c0_i32 = arith.constant 0 : i32
    %c0_i32_0 = arith.constant 0 : i32
    return %arg0, %arg1, %c0_i32 : i32, i32, i32
  }
  func.func @transform_9(%arg0: i32, %arg1: i32) -> (i32, i32, i32) {
    %c0_i32 = arith.constant 0 : i32
    %c0_i32_0 = arith.constant 0 : i32
    return %arg0, %arg1, %c0_i32 : i32, i32, i32
  }
}

</mosaic_0001>

<bundles_post_ra>
// kernel: tpu_custom_call.1
= control target key start
LH: loop header
LB: loop body
LE: loop exit
PB: predicated region body
PF: predicated region fallthrough
CT: control target
= control target key end

     0   :  { %s2509_s0 = inlined_call_operand.hbm [shape: f32[2,128,32], index: 0, kind: input, shape index: {}]   ;;  %s2510_s1 = inlined_call_operand.hbm [shape: bf16[32,128], index: 1, kind: input, shape index: {}]   ;;  %s2511_s2 = inlined_call_operand.hbm [shape: f32[1,128], index: 2, kind: input, shape index: {}]   ;;  %s2512_s3 = inlined_call_operand.hbm [shape: bf16[32,128], index: 3, kind: input, shape index: {}]   ;;  %s2513_s4 = inlined_call_operand.hbm [shape: f32[1,128], index: 4, kind: input, shape index: {}]   ;;  %s2514_s5 = inlined_call_operand.hbm [shape: bf16[32,128], index: 5, kind: input, shape index: {}]   ;;  %s2515_s6 = inlined_call_operand.hbm [shape: f32[1,128], index: 6, kind: input, shape index: {}]   ;;  %s2516_s7 = inlined_call_operand.hbm [shape: bf16[2,128,128], index: 7, kind: output, shape index: {0}]   ;;  %s2517_s8 = inlined_call_operand.hbm [shape: bf16[2,128,128], index: 8, kind: output, shape index: {1}]   ;;  %s2518_s9 = inlined_call_operand.hbm [shape: bf16[2,128,128], index: 9, kind: output, shape index: {2}]  }
   0x1   :  { %2531 = sst [smem:[#allocation26_spill]] %s2509_s0 }
   0x2   :  { %2532 = sst [smem:[#allocation27_spill]] %s2510_s1 }
   0x3   :  { %2533 = sst [smem:[#allocation28_spill]] %s2511_s2 }
   0x4   :  { %2534 = sst [smem:[#allocation29_spill]] %s2512_s3 }
   0x5   :  { %2535 = sst [smem:[#allocation30_spill]] %s2513_s4 }
   0x6   :  { %2536 = sst [smem:[#allocation31_spill]] %s2516_s7 }
   0x7   :  { %2537 = sst [smem:[#allocation32_spill]] %s2517_s8 }
   0x8   :  { %2538 = sst [smem:[#allocation33_spill]] %s2518_s9 }
   0x9   :  { %15 = vsyncpa [#allocation3], 0 }
   0xa   :  { %17 = vsyncpa [#allocation3 + $0x1], 0 }
   0xb   :  { %18 = vsyncpa [#allocation6], 0 }
   0xc   :  { %19 = vsyncpa [#allocation9], 0 }
   0xd   :  { %20 = vsyncpa [#allocation12], 0 }
   0xe   :  { %21 = vsyncpa [#allocation4], 0 }
   0xf   :  { %23 = vsyncpa [#allocation4 + $0x1], 0 }
  0x10   :  { %24 = vsyncpa [#allocation16], 0 }
  0x11   :  { %26 = vsyncpa [#allocation16 + $0x1], 0  ;;  %s2002_s30 = smov 0   ;;  %s2004_s10 = smov 0  }
  0x12   :  { %s2006_s11 = smov 0   ;;  %s2008_s12 = smov 0  }
  0x13   :  { %s2010_s13 = smov 0   ;;  %s2012_s14 = smov 0  }
  0x14   :  { %s2014_s15 = smov 0   ;;  %s2016_s16 = smov 0  }
  0x15 LB: > { %2539 = sst [smem:[#allocation24_spill]] %s1918_s12  ;;  %s2043_s17 = sadd.s32 4294967295, %s1934_s16   ;;  %s1934_s16 = sphi %s2016_s16, %s32_s16   ;;  %s1930_s15 = sphi %s2014_s15, %s2579_s15   ;;  %s1926_s14 = sphi %s2012_s14, %s2578_s14   ;;  %s1922_s13 = sphi %s2010_s13, %s2577_s13   ;;  %s1918_s12 = sphi %s2008_s12, %s2576_s12   ;;  %s1914_s11 = sphi %s2006_s11, %s2575_s11   ;;  %s1910_s10 = sphi %s2004_s10, %s2574_s10   ;;  %s1906_s30 = sphi %s2002_s30, %s2573_s30  }
  0x16   : > { %2540 = sst [smem:[#allocation25_spill]] %s1922_s13  ;;  %p1172_p0 = scmp.ge.s32.totalorder %s1934_s16, 1 }
  0x17   : > { %p2522_p1 = scmp.eq.s32.totalorder %s2043_s17, 0  ;;  %p287_p2 = scmp.lt.s32.totalorder %s1934_s16, 5 }
  0x18   : > { %s1936_s19 = smov [#allocation5]   ;;  %s1937_s22 = smov [#allocation8]  }
  0x19   : > { %p2048_p3 = pnand %p1172_p0, %p287_p2  ;;  %s299_s20 = sshll.u32 %s1936_s19, 4  ;;  %s2052_s20 = int_to_ptr.vmem [resolvable:$true] %s299_s20 }
  0x1a   : > { %s323_s23 = sshll.u32 %s1937_s22, 4  ;;  %s1938_s24 = smov [#allocation11]   ;;  %s2062_s23 = int_to_ptr.vmem [resolvable:$true] %s323_s23 }
  0x1b   : > { %s2541_s18 = scalar_select %p2048_p3, 1, 0 }
  0x1c   : > { %p1437_p4 = pneg %p2048_p3  ;;  %s2064_s25 = sshll.u32 %s1938_s24, 4  ;;  %s348_s25 = int_to_ptr.vmem [resolvable:$true] %s2064_s25 }
  0x1d   : > { %s2543_s1 = sld [smem:[#allocation27_spill]] }
  0x1e   : > { %p2058_p5 = pnand %p1437_p4, %p2522_p1 }
  0x20   : > { %p2074_p7 = pneg %p2058_p5 }
  0x23   : > { %s1566_s28 = scalar_lea.hbm %s2543_s1, 256 }
  0x24   : > { %p1567_p6 = scmp.ne.s32.totalorder %s2543_s1, %s1566_s28  ;;  %p1573_p10 = scmp.lt.u32.totalorder %s1566_s28, %s2543_s1 }
  0x26   : > { %p1569_p8 = pnand %p2074_p7, %p1567_p6 }
  0x28   : > { %p1570_p9 = pneg %p1569_p8 }
  0x2a   : > { %p1575_p11 = pnand %p1573_p10, %p1570_p9 }
  0x2c   : > { %1578 = shalt.err (!%p1575_p11)
}
  0x2d   : > { %s1579_s26 = scalar_lea.vmem %s2052_s20, 256  ;;  %p1587_p2 = scmp.lt.s32.totalorder %s2052_s20, %s2052_s20 }
  0x2e   : > { %p1580_p12 = scmp.ne.s32.totalorder %s2052_s20, %s1579_s26  ;;  %p1588_p4 = scmp.lt.s32.totalorder %s1579_s26, %s1579_s26 }
  0x30   : > { %p1582_p13 = pnand %p1580_p12, %p2074_p7  ;;  %p1589_p6 = por %p1588_p4, %p1587_p2 }
  0x32   : > { %p1583_p0 = pneg %p1582_p13 }
  0x34   : > { %p1590_p8 = pnand %p1589_p6, %p1583_p0 }
  0x36   : > { %1593 = shalt.err (!%p1590_p8)
}
  0x37   : > { %s1939_s27 = smov 64   ;;  %s1940_s28 = smov 4  }
  0x38   : > { %1440 = dma.hbm_to_vmem [thread:$0]  (!%p2058_p5), %s2543_s1, 256, %s2052_s20, [#allocation6], %s1939_s27, %s1939_s27, %s1940_s28  }
  0x39   : > { %s2545_s3 = sld [smem:[#allocation29_spill]] }
  0x3f   : > { %s1594_s26 = scalar_lea.hbm %s2545_s3, 256 }
  0x40   : > { %p1595_p9 = scmp.ne.s32.totalorder %s2545_s3, %s1594_s26  ;;  %p1601_p12 = scmp.lt.u32.totalorder %s1594_s26, %s2545_s3 }
  0x42   : > { %p1597_p10 = pnand %p1595_p9, %p2074_p7 }
  0x44   : > { %p1598_p11 = pneg %p1597_p10 }
  0x46   : > { %p1603_p13 = pnand %p1601_p12, %p1598_p11 }
  0x48   : > { %1606 = shalt.err (!%p1603_p13)
}
  0x49   : > { %s1607_s20 = scalar_lea.vmem %s2062_s23, 256  ;;  %p1615_p6 = scmp.lt.s32.totalorder %s2062_s23, %s2062_s23 }
  0x4a   : > { %p1608_p0 = scmp.ne.s32.totalorder %s2062_s23, %s1607_s20  ;;  %p1616_p8 = scmp.lt.s32.totalorder %s1607_s20, %s1607_s20 }
  0x4c   : > { %p1610_p2 = pnand %p1608_p0, %p2074_p7  ;;  %p1617_p9 = por %p1616_p8, %p1615_p6 }
  0x4e   : > { %p1611_p4 = pneg %p1610_p2 }
  0x50   : > { %p1618_p10 = pnand %p1617_p9, %p1611_p4 }
  0x52   : > { %1621 = shalt.err (!%p1618_p10)
}
  0x53   : > { %1446 = dma.hbm_to_vmem [thread:$0]  (!%p2058_p5), %s2545_s3, 256, %s2062_s23, [#allocation9], %s1939_s27, %s1939_s27, %s1940_s28  }
  0x54   : > { %s1622_s29 = scalar_lea.hbm %s2514_s5, 256 }
  0x55   : > { %p1623_p11 = scmp.ne.s32.totalorder %s2514_s5, %s1622_s29  ;;  %p1629_p0 = scmp.lt.u32.totalorder %s1622_s29, %s2514_s5 }
  0x57   : > { %p1625_p12 = pnand %p1623_p11, %p2074_p7 }
  0x59   : > { %p1626_p13 = pneg %p1625_p12 }
  0x5b   : > { %p1631_p2 = pnand %p1629_p0, %p1626_p13 }
  0x5d   : > { %1634 = shalt.err (!%p1631_p2)
}
  0x5e   : > { %s1635_s20 = scalar_lea.vmem %s348_s25, 256  ;;  %p1643_p9 = scmp.lt.s32.totalorder %s348_s25, %s348_s25 }
  0x5f   : > { %p1636_p4 = scmp.ne.s32.totalorder %s348_s25, %s1635_s20  ;;  %p1644_p10 = scmp.lt.s32.totalorder %s1635_s20, %s1635_s20 }
  0x61   : > { %p1638_p6 = pnand %p1636_p4, %p2074_p7  ;;  %p1645_p1 = por %p1644_p10, %p1643_p9 }
  0x63   : > { %p1639_p8 = pneg %p1638_p6 }
  0x65   : > { %p1646_p3 = pnand %p1645_p1, %p1639_p8 }
  0x67   : > { %1649 = shalt.err (!%p1646_p3)
}
  0x68   : > { %1452 = dma.hbm_to_vmem [thread:$0]  (!%p2058_p5), %s2514_s5, 256, %s348_s25, [#allocation12], %s1939_s27, %s1939_s27, %s1940_s28  }
  0x69   : > { %s1941_s8 = smov [#allocation7]   ;;  %s1942_s13 = smov [#allocation10]  }
  0x6a   : > { %s313_s12 = sshll.u32 %s1941_s8, 4  ;;  %s337_s29 = sshll.u32 %s1942_s13, 4  ;;  %s314_s12 = int_to_ptr.vmem [resolvable:$true] %s313_s12  ;;  %s338_s29 = int_to_ptr.vmem [resolvable:$true] %s337_s29 }
  0x6b   : > { %s2546_s2 = sld [smem:[#allocation28_spill]] }
  0x71   : > { %s1650_s24 = scalar_lea.hbm %s2546_s2, 16 }
  0x72   : > { %p1651_p1 = scmp.ne.s32.totalorder %s2546_s2, %s1650_s24  ;;  %p1657_p12 = scmp.lt.u32.totalorder %s1650_s24, %s2546_s2 }
  0x74   : > { %p1653_p3 = pnand %p1651_p1, %p2074_p7 }
  0x76   : > { %p1654_p11 = pneg %p1653_p3 }
  0x78   : > { %p1659_p13 = pnand %p1657_p12, %p1654_p11 }
  0x7a   : > { %1662 = shalt.err (!%p1659_p13)
}
  0x7b   : > { %s1663_s25 = scalar_lea.vmem %s314_s12, 16  ;;  %s1670_s27 = scalar_lea.vmem %s314_s12, 32 }
  0x7c   : > { %p1664_p0 = scmp.ne.s32.totalorder %s314_s12, %s1663_s25  ;;  %p1671_p6 = scmp.lt.s32.totalorder %s314_s12, %s314_s12 }
  0x7d   : > { %p1672_p8 = scmp.lt.s32.totalorder %s1670_s27, %s1663_s25 }
  0x7e   : > { %p1666_p2 = pnand %p1664_p0, %p2074_p7 }
  0x7f   : > { %p1673_p9 = por %p1672_p8, %p1671_p6 }
  0x80   : > { %p1667_p4 = pneg %p1666_p2 }
  0x82   : > { %p1674_p10 = pnand %p1673_p9, %p1667_p4 }
  0x84   : > { %1677 = shalt.err (!%p1674_p10)
}
  0x85   : > { %1443 = dma.hbm_to_vmem [thread:$0]  (!%p2058_p5), %s2546_s2, 16, %s314_s12, [#allocation6]  }
  0x86   : > { %s2547_s4 = sld [smem:[#allocation30_spill]] }
  0x8c   : > { %s1678_s13 = scalar_lea.hbm %s2547_s4, 16 }
  0x8d   : > { %p1679_p1 = scmp.ne.s32.totalorder %s2547_s4, %s1678_s13  ;;  %p1685_p12 = scmp.lt.u32.totalorder %s1678_s13, %s2547_s4 }
  0x8f   : > { %p1681_p3 = pnand %p1679_p1, %p2074_p7 }
  0x91   : > { %p1682_p11 = pneg %p1681_p3 }
  0x93   : > { %p1687_p13 = pnand %p1685_p12, %p1682_p11 }
  0x95   : > { %1690 = shalt.err (!%p1687_p13)
}
  0x96   : > { %s1691_s20 = scalar_lea.vmem %s338_s29, 16  ;;  %s1698_s12 = scalar_lea.vmem %s338_s29, 32 }
  0x97   : > { %p1692_p0 = scmp.ne.s32.totalorder %s338_s29, %s1691_s20  ;;  %p1699_p6 = scmp.lt.s32.totalorder %s338_s29, %s338_s29 }
  0x98   : > { %p1700_p8 = scmp.lt.s32.totalorder %s1698_s12, %s1691_s20 }
  0x99   : > { %p1694_p2 = pnand %p1692_p0, %p2074_p7 }
  0x9a   : > { %p1701_p9 = por %p1700_p8, %p1699_p6 }
  0x9b   : > { %p1695_p4 = pneg %p1694_p2 }
  0x9d   : > { %p1702_p10 = pnand %p1701_p9, %p1695_p4 }
  0x9f   : > { %1705 = shalt.err (!%p1702_p10)
}
  0xa0   : > { %1449 = dma.hbm_to_vmem [thread:$0]  (!%p2058_p5), %s2547_s4, 16, %s338_s29, [#allocation9]  }
  0xa1   : > { %s1943_s27 = smov [#allocation13]   ;;  %s1706_s8 = scalar_lea.hbm %s2515_s6, 16 }
  0xa2   : > { %s361_s28 = sshll.u32 %s1943_s27, 4  ;;  %p1707_p1 = scmp.ne.s32.totalorder %s2515_s6, %s1706_s8  ;;  %s362_s28 = int_to_ptr.vmem [resolvable:$true] %s361_s28 }
  0xa3   : > { %p1713_p12 = scmp.lt.u32.totalorder %s1706_s8, %s2515_s6 }
  0xa4   : > { %p1709_p3 = pnand %p1707_p1, %p2074_p7 }
  0xa6   : > { %p1710_p11 = pneg %p1709_p3 }
  0xa8   : > { %p1715_p13 = pnand %p1713_p12, %p1710_p11 }
  0xaa   : > { %1718 = shalt.err (!%p1715_p13)
}
  0xab   : > { %s1719_s29 = scalar_lea.vmem %s362_s28, 16  ;;  %s1726_s26 = scalar_lea.vmem %s362_s28, 32 }
  0xac   : > { %p1720_p0 = scmp.ne.s32.totalorder %s362_s28, %s1719_s29  ;;  %p1727_p6 = scmp.lt.s32.totalorder %s362_s28, %s362_s28 }
  0xad   : > { %p1728_p8 = scmp.lt.s32.totalorder %s1726_s26, %s1719_s29 }
  0xae   : > { %p1722_p2 = pnand %p1720_p0, %p2074_p7 }
  0xaf   : > { %p1729_p9 = por %p1728_p8, %p1727_p6 }
  0xb0   : > { %p1723_p4 = pneg %p1722_p2 }
  0xb2   : > { %p1730_p10 = pnand %p1729_p9, %p1723_p4 }
  0xb4   : > { %1733 = shalt.err (!%p1730_p10)
}
  0xb5   : > { %1455 = dma.hbm_to_vmem [thread:$0]  (!%p2058_p5), %s2515_s6, 16, %s362_s28, [#allocation12]  }
  0xb6   : > { %s2524_s9 = sadd.s32 4294967294, %s1934_s16   ;;  %s41_s23 = sadd.s32 1, %s1926_s14 }
  0xb7   : > { %p42_p7 = scmp.ge.s32.totalorder %s41_s23, 2  ;;  %s44_s21 = sadd.s32 1, %s1930_s15 }
  0xb8   : > { %s53_s25 = sadd.s32 1, %s1914_s11  ;;  %p60_p1 = scmp.ne.s32.totalorder %s1914_s11, %s1910_s10 }
  0xb9   : > { %s2581_s23 = smov (%p42_p7, %s41_s23), 0  ;;  %s2583_s21 = smov (!%p42_p7, %s44_s21), %s1930_s15 }
  0xba   : > { %s49_s27 = ssub.s32 %s1926_s14, %s2581_s23  ;;  %p61_p3 = scmp.eq.s32.totalorder %s1934_s16, 0 }
  0xbb   : > { %p46_p5 = scmp.ge.s32.totalorder %s2583_s21, 2  ;;  %p66_p11 = scmp.ne.s32.totalorder %s1910_s10, %s1906_s30 }
  0xbc   : > { %p2214_p12 = por %p61_p3, %p60_p1  ;;  %p218_p13 = scmp.eq.s32.totalorder %s2043_s17, 3 }
  0xbd   : > { %s2585_s21 = smov (%p46_p5, %s2583_s21), 0  ;;  %p2549_p0 = scmp.eq.s32.totalorder %s2043_s17, 0 }
  0xbe   : > { %p2227_p4 = por %p218_p13, %p60_p1  ;;  %s48_s8 = ssub.s32 %s1930_s15, %s2585_s21 }
  0xbf   : > { %p2223_p2 = por %p2549_p0, %p66_p11  ;;  %p224_p6 = scmp.eq.s32.totalorder %s2524_s9, 3 }
  0xc0   : > { %s2551_s1 = scalar_select %p2227_p4, 1, 0 }
  0xc1   : > { %s50_s13 = sor.u32 %s49_s27, %s48_s8  ;;  %p1476_p8 = scmp.lt.s32.totalorder %s1934_s16, 4 }
  0xc2   : > { %p51_p9 = scmp.eq.s32.totalorder %s50_s13, 0  ;;  %p2236_p10 = por %p224_p6, %p66_p11 }
  0xc3   : > { %s372_s22 = sand.u32 1, %s1914_s11   ;;  %s1181_s24 = sshll.u32 %s1926_s14, 3 }
  0xc4   : > { %s2552_s19 = scalar_select %p2236_p10, 1, 0 }
  0xc5   : > { %s2243_s29 = scalar_select %p51_p9, %s1914_s11, %s53_s25  }
  0xc6   : > { %s1180_s26 = sshll.u32 %s372_s22, 6  ;;  %s1182_s20 = sshll.u32 %s1930_s15, 4 }
  0xc7   : > { %s382_s12 = sadd.s32 %s1182_s20, %s1181_s24  ;;  %s376_s2 = scalar_lea.vmem [#allocation2], %s1180_s26 }
  0xc8   : > { %s385_s3 = sshll.u32 %s376_s2, 4  ;;  %s1183_s4 = sshll.u32 %s382_s12, 7  ;;  %s2246_s3 = int_to_ptr.vmem [resolvable:$true] %s385_s3 }
  0xc9   : > { %s2553_s0 = sld [smem:[#allocation26_spill]]  ;;  %p2257_p7 = pnand %p1476_p8, %p2214_p12 }
  0xca   : > { %s2261_s2 = scalar_lea.sflag [#allocation3], %s372_s22 }
  0xcb   : > { %p1736_p3 = pneg %p2257_p7 }
  0xcf   : > { %s2251_s8 = scalar_lea.hbm %s2553_s0, %s1183_s4  ;;  %s1739_s28 = scalar_lea.hbm %s2553_s0, 4096 }
  0xd0   : > { %s1734_s13 = scalar_lea.hbm %s2251_s8, 1024  ;;  %p1740_p12 = scmp.lt.u32.totalorder %s2251_s8, %s2553_s0 }
  0xd1   : > { %p1735_p1 = scmp.ne.s32.totalorder %s2251_s8, %s1734_s13  ;;  %p1741_p13 = scmp.lt.u32.totalorder %s1739_s28, %s1734_s13 }
  0xd2   : > { %p1743_p6 = scmp.lt.u32.totalorder %s1734_s13, %s2251_s8 }
  0xd3   : > { %p1737_p5 = pnand %p1736_p3, %p1735_p1  ;;  %p1742_p0 = por %p1741_p13, %p1740_p12 }
  0xd5   : > { %p1738_p11 = pneg %p1737_p5  ;;  %p1744_p8 = por %p1743_p6, %p1742_p0 }
  0xd7   : > { %p1745_p9 = pnand %p1744_p8, %p1738_p11 }
  0xd9   : > { %1748 = shalt.err (!%p1745_p9)
}
  0xda   : > { %s1749_s22 = scalar_lea.vmem %s2246_s3, 1024  ;;  %s1944_s20 = smov [#allocation2]  }
  0xdb   : > { %p1750_p1 = scmp.ne.s32.totalorder %s2246_s3, %s1749_s22  ;;  %s1754_s12 = sshll.u32 %s1944_s20, 4  ;;  %s1755_s12 = int_to_ptr.vmem [resolvable:$false] %s1754_s12 }
  0xdc   : > { %s1756_s27 = scalar_lea.vmem %s1755_s12, 2048  ;;  %p1757_p4 = scmp.lt.s32.totalorder %s2246_s3, %s1755_s12 }
  0xdd   : > { %p1752_p5 = pnand %p1750_p1, %p1736_p3  ;;  %p1758_p12 = scmp.lt.s32.totalorder %s1756_s27, %s1749_s22 }
  0xdf   : > { %p1753_p10 = pneg %p1752_p5  ;;  %p1759_p13 = por %p1758_p12, %p1757_p4 }
  0xe1   : > { %p1760_p0 = pnand %p1759_p13, %p1753_p10 }
  0xe3   : > { %1763 = shalt.err (!%p1760_p0)
}
  0xe4   : > { %s1945_s13 = smov 128   ;;  %s1946_s4 = smov 8  }
  0xe5   : > { %1459 = dma.hbm_to_vmem [thread:$0]  (!%p2257_p7), %s2251_s8, 1024, %s2246_s3, %s2261_s2, %s1945_s13, %s1945_s13, %s1946_s4  }
  0xe6   : > { %p2555_p3 = scmp.ne.s32.totalorder %s2541_s18, 0 }
  0xe7   : > { %s2292_s9 = sand.u32 (!%p2555_p3), 1, %s1910_s10  }
  0xe8   : > { %397 = sbr.rel (%p2555_p3) target bundleno = 545 (0x221), region = 48  ;;  %s1185_s28 = sshll.u32 (!%p2555_p3), %s2292_s9, 6 }
  0xe9   : > { %s400_s24 = scalar_lea.sflag (!%p2555_p3), [#allocation3], %s2292_s9  ;;  %s403_s26 = scalar_lea.vmem (!%p2555_p3), [#allocation2], %s1185_s28 }
  0xef   : > { %1881 = dma.done.wait (%p2223_p2), %s400_s24, 1024  }
  0xf0   : > { %1883 = vsyncadd (%p2223_p2), %s400_s24, 4294966272  ;;  %p2556_p4 = scmp.eq.s32.totalorder %s2043_s17, 0 }
  0xf2   : > { %1885 = dma.done.wait (%p2556_p4), [#allocation6], 272   ;;  %p2557_p10 = pmov %p2556_p4 }
  0xf3   : > { %p2558_p7 = pmov %p2556_p4 }
  0xf4   : > { %1887 = vsyncadd (%p2557_p10), [#allocation6], 4294967024 }
  0xf5   : > { %1889 = dma.done.wait (%p2558_p7), [#allocation9], 272   ;;  %p2559_p11 = pmov %p2556_p4 }
  0xf6   : > { %p2560_p6 = pmov %p2556_p4 }
  0xf7   : > { %1891 = vsyncadd (%p2559_p11), [#allocation9], 4294967024 }
  0xf8   : > { %1893 = dma.done.wait (%p2560_p6), [#allocation12], 272   ;;  %p2561_p8 = pmov %p2556_p4 }
  0xf9   : > { %v1560_v0 = vld [vmem:[#allocation5] sm:$0xff]   ;;  %v1561_v1 = vld [vmem:[#allocation5 + $0x8] sm:$0xff]   ;;  %vm512_vm0 = vcmask 261120   ;;  %v479_v7 = vld [vmem:[%s403_s26 + $0x10] sm:$0xff]  ;;  %s2562_s3 = sld [smem:[#allocation24_spill]]  ;;  %s2563_s18 = sld [smem:[#allocation25_spill]] }
  0xfa   : > { %1895 = vsyncadd (%p2561_p8), [#allocation12], 4294967024  ;;  %1365 = vmatprep.subr.bf16.mxu0 %v1560_v0  ;;  %1401 = vmatprep.subr.bf16.mxu1 %v1560_v0  ;;  %v477_v2 = vld [vmem:[%s403_s26] sm:$0xff]  ;;  %v478_v3 = vld [vmem:[%s403_s26 + $0x8] sm:$0xff]  ;;  %s2327_s25 = sshll.u32 %s2292_s9, 5  ;;  %s2564_s4 = sld [smem:[#allocation31_spill]] }
  0xfb   : > { %v481_v4 = vld [vmem:[%s403_s26 + $0x20] sm:$0xff]  ;;  %1366 = vmatpush3.bf16.msra.mxu0 %v1560_v0  ;;  %1403 = vmatpush3.bf16.msra.mxu1 %v1560_v0  ;;  %v485_v5 = vpack.c.bf16 %v478_v3, %v477_v2  ;;  %v482_v6 = vld [vmem:[%s403_s26 + $0x28] sm:$0xff]  ;;  %v480_v8 = vld [vmem:[%s403_s26 + $0x18] sm:$0xff]  ;;  %s2330_s22 = scalar_lea.vmem [#allocation14], %s2327_s25  ;;  %s895_s24 = scalar_lea.sflag [#allocation4], %s2292_s9 }
  0xfc   : > { %1367 = vmatprep.subr.bf16.mxu0 %v1561_v1  ;;  %1402 = vmatprep.subr.bf16.mxu1 %v1561_v1  ;;  %v487_v9 = vpack.c.bf16 %v482_v6, %v481_v4  ;;  %v483_v10 = vld [vmem:[%s403_s26 + $0x30] sm:$0xff]  ;;  %v484_v11 = vld [vmem:[%s403_s26 + $0x38] sm:$0xff]  ;;  %v486_v13 = vpack.c.bf16 %v480_v8, %v479_v7  ;;  %v1563_v15 = vld [vmem:[#allocation11] sm:$0xff]   ;;  %s920_s20 = sshll.u32 %s2330_s22, 4  ;;  %p2565_p9 = scmp.ne.s32.totalorder %s2551_s1, 0  ;;  %s2337_s20 = int_to_ptr.vmem [resolvable:$true] %s920_s20 }
  0xfd   : > { %1369 = vmatprep.mubr.msk.bf16.mxu0 %vm512_vm0, %v485_v5  ;;  %v1562_v12 = vld [vmem:[#allocation8] sm:$0xff]   ;;  %v488_v14 = vpack.c.bf16 %v484_v11, %v483_v10  ;;  %v1564_v16 = vld [vmem:[#allocation8 + $0x8] sm:$0xff]   ;;  %v1195_v18 = vld [vmem:[#allocation7] ss:$0 sm:$0xff]  ;;  %s1764_s26 = scalar_lea.vmem %s2337_s20, 512 }
  0xfe   : > { %1373 = vmatprep.mubr.msk.bf16.mxu1 %vm512_vm0, %v487_v9  ;;  %v1565_v17 = vld [vmem:[#allocation11 + $0x8] sm:$0xff]   ;;  %v2333_v37 = vld [vmem:[#allocation13] ss:$0 sm:$0xff]  ;;  %v2339_v49 = vld [vmem:[#allocation10] ss:$0 sm:$0xff]  ;;  %p1765_p2 = scmp.ne.s32.totalorder %s2337_s20, %s1764_s26 }
  0xff   : > { %1368 = vmatpush3.bf16.msra.mxu0 %v1561_v1  ;;  %1404 = vmatpush3.bf16.msra.mxu1 %v1561_v1  ;;  %s1243_s7 = sshll.u32 %s2562_s3, 3  ;;  %s1244_s8 = sshll.u32 %s2563_s18, 4 }
 0x100   : > { %1377 = vmatprep.subr.bf16.mxu1 %v1562_v12  ;;  %1389 = vmatprep.subr.bf16.mxu0 %v1563_v15  ;;  %s917_s2 = sadd.s32 %s1244_s8, %s1243_s7  ;;  %p1766_p1 = pnand %p1765_p2, %p2565_p9 }
 0x101   : > { %s2335_s12 = sshll.u32 %s917_s2, 6  ;;  %s1947_s3 = smov [#allocation14]  }
 0x102   : > { %1370 = vmatmul.mubr.msk.bf16.vlgmr.msra.gmra.mrb[0].mxu0 %vm512_vm0, %v486_v13  ;;  %1374 = vmatmul.mubr.msk.bf16.vlgmr.msra.gmra.mrb[0].mxu1 %vm512_vm0, %v488_v14  ;;  %s2345_s28 = scalar_lea.hbm %s2564_s4, %s2335_s12  ;;  %p1767_p5 = pneg %p1766_p1 }
 0x103   : > { %1378 = vmatpush3.bf16.msra.mxu1 %v1562_v12  ;;  %1390 = vmatpush3.bf16.msra.mxu0 %v1563_v15  ;;  %s1768_s18 = sshll.u32 %s1947_s3, 4  ;;  %s1769_s18 = int_to_ptr.vmem [resolvable:$false] %s1768_s18 }
 0x104   : > { %1379 = vmatprep.subr.bf16.mxu1 %v1564_v16  ;;  %1391 = vmatprep.subr.bf16.mxu0 %v1565_v17  ;;  %s1770_s7 = scalar_lea.vmem %s1769_s18, 1024  ;;  %p1771_p12 = scmp.lt.s32.totalorder %s2337_s20, %s1769_s18 }
 0x105   : > { %1381 = vmatprep.mubr.msk.bf16.mxu1 %vm512_vm0, %v485_v5  ;;  %1393 = vmatprep.mubr.msk.bf16.mxu0 %vm512_vm0, %v485_v5  ;;  %p1772_p13 = scmp.lt.s32.totalorder %s1770_s7, %s1764_s26 }
 0x107   : > { %1380 = vmatpush3.bf16.msra.mxu1 %v1564_v16  ;;  %1392 = vmatpush3.bf16.msra.mxu0 %v1565_v17  ;;  %p1773_p0 = por %p1772_p13, %p1771_p12 }
 0x109   : > { %p1774_p3 = pnand %p1773_p0, %p1767_p5 }
 0x10a   : > { %1382 = vmatmul.mubr.msk.bf16.vlgmr.msra.gmra.mrb[4].mxu1 %vm512_vm0, %v486_v13  ;;  %1394 = vmatmul.mubr.msk.bf16.vlgmr.msra.gmra.mrb[4].mxu0 %vm512_vm0, %v486_v13 }
 0x10b   : > { %1385 = vmatprep.mubr.msk.bf16.mxu1 %vm512_vm0, %v487_v9  ;;  %1397 = vmatprep.mubr.msk.bf16.mxu0 %vm512_vm0, %v487_v9 }
 0x112   : > { %1386 = vmatmul.mubr.msk.bf16.gmra.mrb[8].mxu1 %vm512_vm0, %v488_v14  ;;  %1398 = vmatmul.mubr.msk.bf16.gmra.mrb[8].mxu0 %vm512_vm0, %v488_v14 }
 0x1d5   : > { %v1371_v19 = vpop.f32.mrb[0].mxu0  ;;  %v1375_v20 = vpop.f32.mrb[0].mxu1 }
 0x1d6   : > { %v568_v21 = vadd.f32 %v1371_v19, %v1195_v18  ;;  %v584_v22 = vadd.f32 %v1375_v20, %v1195_v18  ;;  %v559_v23 = vpop.f32.mrb[1].mxu0  ;;  %v575_v24 = vpop.f32.mrb[1].mxu1 }
 0x1d7   : > { %v560_v25 = vadd.f32 %v1195_v18, %v559_v23  ;;  %v576_v26 = vadd.f32 %v1195_v18, %v575_v24  ;;  %v1372_v27 = vpop.f32.mrb[2].mxu0  ;;  %v1376_v28 = vpop.f32.mrb[2].mxu1 }
 0x1d8   : > { %v768_v29 = vmul.f32 0.17677669, %v568_v21  ;;  %v571_v30 = vadd.f32 %v1372_v27, %v1195_v18  ;;  %v587_v31 = vadd.f32 %v1376_v28, %v1195_v18  ;;  %v562_v32 = vpop.f32.mrb[3].mxu0  ;;  %v578_v33 = vpop.f32.mrb[3].mxu1  ;;  %v772_v34 = vmul.f32 0.17677669, %v584_v22 }
 0x1d9   : > { %v563_v35 = vadd.f32 %v1195_v18, %v562_v32  ;;  %v579_v36 = vadd.f32 %v1195_v18, %v578_v33  ;;  %v766_v38 = vmul.f32 0.17677669, %v560_v25  ;;  %v770_v41 = vmul.f32 0.17677669, %v576_v26 }
 0x1da   : > { %v769_v39 = vmul.f32 0.17677669, %v571_v30  ;;  %v773_v40 = vmul.f32 0.17677669, %v587_v31 }
 0x1db   : > { %v767_v42 = vmul.f32 0.17677669, %v563_v35  ;;  %v771_v43 = vmul.f32 0.17677669, %v579_v36 }
 0x1dc   : > { %v1286_v44 = vpack.c.bf16 %v769_v39, %v768_v29  ;;  %v1296_v45 = vpack.c.bf16 %v773_v40, %v772_v34 }
 0x1dd   : > { %v1281_v46 = vpack.c.bf16 %v767_v42, %v766_v38  ;;  %v1291_v47 = vpack.c.bf16 %v771_v43, %v770_v41  ;;  %v1383_v48 = vpop.f32.mrb[4].mxu1  ;;  %v1395_v50 = vpop.f32.mrb[4].mxu0 }
 0x1de   : > { %1338 = vst [vmem:[%s2330_s22 + $0x8] sm:$0xff] %v1286_v44   ;;  %1340 = vst [vmem:[%s2330_s22 + $0x18] sm:$0xff] %v1296_v45   ;;  %v744_v51 = vadd.f32 %v1395_v50, %v2333_v37  ;;  %v647_v52 = vpop.f32.mrb[5].mxu1  ;;  %v735_v53 = vpop.f32.mrb[5].mxu0  ;;  %v656_v56 = vadd.f32 %v1383_v48, %v2339_v49 }
 0x1df   : > { %1282 = vst [vmem:[%s2330_s22] sm:$0xff] %v1281_v46   ;;  %1339 = vst [vmem:[%s2330_s22 + $0x10] sm:$0xff] %v1291_v47   ;;  %v1384_v54 = vpop.f32.mrb[6].mxu1  ;;  %v1396_v55 = vpop.f32.mrb[6].mxu0 }
 0x1e0   : > { %v659_v57 = vadd.f32 %v1384_v54, %v2339_v49  ;;  %v747_v58 = vadd.f32 %v1396_v55, %v2333_v37  ;;  %v650_v59 = vpop.f32.mrb[7].mxu1  ;;  %v738_v60 = vpop.f32.mrb[7].mxu0 }
 0x1e1   : > { %1777 = shalt.err (!%p1774_p3)
}
 0x1e2   : > { %s1778_s8 = scalar_lea.hbm %s2345_s28, 512  ;;  %s1782_s27 = scalar_lea.hbm %s2564_s4, 2048 }
 0x1e3   : > { %p1779_p4 = scmp.ne.s32.totalorder %s2345_s28, %s1778_s8  ;;  %p1783_p11 = scmp.lt.u32.totalorder %s2345_s28, %s2564_s4 }
 0x1e4   : > { %p1784_p6 = scmp.lt.u32.totalorder %s1782_s27, %s1778_s8  ;;  %p1786_p2 = scmp.lt.u32.totalorder %s1778_s8, %s2345_s28 }
 0x1e5   : > { %p1780_p10 = pnand %p1779_p4, %p2565_p9 }
 0x1e6   : > { %p1785_p8 = por %p1784_p6, %p1783_p11 }
 0x1e7   : > { %p1781_p7 = pneg %p1780_p10 }
 0x1e8   : > { %p1787_p1 = por %p1786_p2, %p1785_p8 }
 0x1ea   : > { %p1788_p5 = pnand %p1787_p1, %p1781_p7 }
 0x1ec   : > { %1791 = shalt.err (!%p1788_p5)
}
 0x1ed   : > { %s2526_s26 = smov 64   ;;  %s2528_s18 = smov 4   ;;  %v648_v61 = vadd.f32 %v2339_v49, %v647_v52  ;;  %v736_v62 = vadd.f32 %v2333_v37, %v735_v53  ;;  %v651_v63 = vadd.f32 %v2339_v49, %v650_v59  ;;  %v739_v0 = vadd.f32 %v2333_v37, %v738_v60  ;;  %v1387_v5 = vpop.f32.mrb[8].mxu1  ;;  %v1399_v6 = vpop.f32.mrb[8].mxu0 }
 0x1ee   : > { %1431 = dma.vmem_to_hbm [thread:$0]  (%p2565_p9), %s2337_s20, 512, %s2345_s28, %s895_s24, %s2526_s26, %s2526_s26, %s2528_s18   ;;  %v1306_v1 = vpack.c.bf16 %v659_v57, %v656_v56  ;;  %v1326_v2 = vpack.c.bf16 %v747_v58, %v744_v51  ;;  %v760_v7 = vadd.f32 %v1399_v6, %v2333_v37  ;;  %v663_v8 = vpop.f32.mrb[9].mxu1  ;;  %v751_v9 = vpop.f32.mrb[9].mxu0  ;;  %v672_v12 = vadd.f32 %v1387_v5, %v2339_v49 }
 0x1ef   : > { %v1301_v3 = vpack.c.bf16 %v651_v63, %v648_v61  ;;  %v1321_v4 = vpack.c.bf16 %v739_v0, %v736_v62  ;;  %s2387_s7 = scalar_lea.vmem [#allocation15], %s2327_s25  ;;  %s2391_s9 = scalar_lea.vmem [#allocation17], %s2327_s25  ;;  %v1388_v10 = vpop.f32.mrb[10].mxu1  ;;  %v1400_v11 = vpop.f32.mrb[10].mxu0  ;;  %v664_v17 = vadd.f32 %v2339_v49, %v663_v8  ;;  %v752_v18 = vadd.f32 %v2333_v37, %v751_v9 }
 0x1f0   : > { %1341 = vst [vmem:[%s2387_s7 + $0x8] sm:$0xff] %v1306_v1   ;;  %1344 = vst [vmem:[%s2391_s9 + $0x8] sm:$0xff] %v1326_v2   ;;  %s938_s20 = sshll.u32 %s2387_s7, 4  ;;  %v675_v13 = vadd.f32 %v1388_v10, %v2339_v49  ;;  %v763_v14 = vadd.f32 %v1400_v11, %v2333_v37  ;;  %v666_v15 = vpop.f32.mrb[11].mxu1  ;;  %v754_v16 = vpop.f32.mrb[11].mxu0  ;;  %s899_s25 = sand.u32 1, %s2043_s17   ;;  %s2407_s20 = int_to_ptr.vmem [resolvable:$true] %s938_s20 }
 0x1f1   : > { %1302 = vst [vmem:[%s2387_s7] sm:$0xff] %v1301_v3   ;;  %1322 = vst [vmem:[%s2391_s9] sm:$0xff] %v1321_v4   ;;  %s956_s28 = sshll.u32 %s2391_s9, 4  ;;  %v667_v19 = vadd.f32 %v2339_v49, %v666_v15  ;;  %v755_v20 = vadd.f32 %v2333_v37, %v754_v16  ;;  %s2566_s8 = sld [smem:[#allocation32_spill]]  ;;  %s2415_s28 = int_to_ptr.vmem [resolvable:$true] %s956_s28 }
 0x1f2   : > { %v1316_v21 = vpack.c.bf16 %v675_v13, %v672_v12  ;;  %v1336_v22 = vpack.c.bf16 %v763_v14, %v760_v7  ;;  %s2567_s13 = sld [smem:[#allocation33_spill]]  ;;  %s2427_s18 = scalar_lea.sflag [#allocation16], %s899_s25 }
 0x1f3   : > { %v1311_v23 = vpack.c.bf16 %v667_v19, %v664_v17  ;;  %v1331_v24 = vpack.c.bf16 %v755_v20, %v752_v18  ;;  %s1792_s0 = scalar_lea.vmem %s2407_s20, 512  ;;  %s1950_s17 = smov [#allocation15]  }
 0x1f4   : > { %1343 = vst [vmem:[%s2387_s7 + $0x18] sm:$0xff] %v1316_v21   ;;  %1346 = vst [vmem:[%s2391_s9 + $0x18] sm:$0xff] %v1336_v22   ;;  %p1793_p12 = scmp.ne.s32.totalorder %s2407_s20, %s1792_s0  ;;  %s1796_s24 = sshll.u32 %s1950_s17, 4  ;;  %s1797_s24 = int_to_ptr.vmem [resolvable:$false] %s1796_s24 }
 0x1f5   : > { %1342 = vst [vmem:[%s2387_s7 + $0x10] sm:$0xff] %v1311_v23   ;;  %1345 = vst [vmem:[%s2391_s9 + $0x10] sm:$0xff] %v1331_v24   ;;  %s1798_s4 = scalar_lea.vmem %s1797_s24, 1024  ;;  %p1799_p3 = scmp.lt.s32.totalorder %s2407_s20, %s1797_s24 }
 0x1f6   : > { %p1794_p13 = pnand %p1793_p12, %p2565_p9  ;;  %p1800_p4 = scmp.lt.s32.totalorder %s1798_s4, %s1792_s0 }
 0x1f7   : > { %s2413_s2 = scalar_lea.hbm %s2566_s8, %s2335_s12 }
 0x1f8   : > { %s2568_s3 = smov %s2567_s13  ;;  %s2423_s26 = scalar_lea.hbm %s2567_s13, %s2335_s12 }
 0x1f9   : > { %p1795_p0 = pneg %p1794_p13  ;;  %p1801_p10 = por %p1800_p4, %p1799_p3 }
 0x1fb   : > { %p1802_p7 = pnand %p1801_p10, %p1795_p0 }
 0x1fd   : > { %1805 = shalt.err (!%p1802_p7)
}
 0x1fe   : > { %s1806_s12 = scalar_lea.hbm %s2413_s2, 512  ;;  %s1810_s25 = scalar_lea.hbm %s2566_s8, 2048 }
 0x1ff   : > { %p1807_p11 = scmp.ne.s32.totalorder %s2413_s2, %s1806_s12  ;;  %p1811_p2 = scmp.lt.u32.totalorder %s2413_s2, %s2566_s8 }
 0x200   : > { %p1812_p1 = scmp.lt.u32.totalorder %s1810_s25, %s1806_s12  ;;  %p1814_p12 = scmp.lt.u32.totalorder %s1806_s12, %s2413_s2 }
 0x201   : > { %p1808_p6 = pnand %p1807_p11, %p2565_p9 }
 0x202   : > { %p1813_p5 = por %p1812_p1, %p1811_p2 }
 0x203   : > { %p1809_p8 = pneg %p1808_p6 }
 0x204   : > { %p1815_p13 = por %p1814_p12, %p1813_p5 }
 0x206   : > { %p1816_p0 = pnand %p1815_p13, %p1809_p8 }
 0x208   : > { %1819 = shalt.err (!%p1816_p0)
}
 0x209   : > { %s2569_s0 = smov 4   ;;  %s2570_s4 = smov 64  }
 0x20a   : > { %1432 = dma.vmem_to_hbm [thread:$0]  (%p2565_p9), %s2407_s20, 512, %s2413_s2, %s2427_s18, %s2570_s4, %s2570_s4, %s2569_s0  }
 0x20b   : > { %s1820_s13 = scalar_lea.vmem %s2415_s28, 512  ;;  %s1951_s17 = smov [#allocation17]  }
 0x20c   : > { %p1821_p3 = scmp.ne.s32.totalorder %s2415_s28, %s1820_s13  ;;  %s1824_s24 = sshll.u32 %s1951_s17, 4  ;;  %s1825_s24 = int_to_ptr.vmem [resolvable:$false] %s1824_s24 }
 0x20d   : > { %s1826_s12 = scalar_lea.vmem %s1825_s24, 1024  ;;  %p1827_p7 = scmp.lt.s32.totalorder %s2415_s28, %s1825_s24 }
 0x20e   : > { %p1822_p4 = pnand %p1821_p3, %p2565_p9  ;;  %p1828_p11 = scmp.lt.s32.totalorder %s1826_s12, %s1820_s13 }
 0x210   : > { %p1823_p10 = pneg %p1822_p4  ;;  %p1829_p6 = por %p1828_p11, %p1827_p7 }
 0x212   : > { %p1830_p8 = pnand %p1829_p6, %p1823_p10 }
 0x214   : > { %1833 = shalt.err (!%p1830_p8)
}
 0x215   : > { %s1834_s20 = scalar_lea.hbm %s2423_s26, 512  ;;  %s1838_s9 = scalar_lea.hbm %s2568_s3, 2048 }
 0x216   : > { %p1835_p2 = scmp.ne.s32.totalorder %s2423_s26, %s1834_s20  ;;  %p1839_p12 = scmp.lt.u32.totalorder %s2423_s26, %s2568_s3 }
 0x217   : > { %p1840_p13 = scmp.lt.u32.totalorder %s1838_s9, %s1834_s20  ;;  %p1842_p3 = scmp.lt.u32.totalorder %s1834_s20, %s2423_s26 }
 0x218   : > { %p1836_p1 = pnand %p1835_p2, %p2565_p9 }
 0x219   : > { %p1841_p0 = por %p1840_p13, %p1839_p12 }
 0x21a   : > { %p1837_p5 = pneg %p1836_p1 }
 0x21b   : > { %p1843_p4 = por %p1842_p3, %p1841_p0 }
 0x21d   : > { %p1844_p10 = pnand %p1843_p4, %p1837_p5 }
 0x21f   : > { %1847 = shalt.err (!%p1844_p10)
}
 0x220   : > { %1433 = dma.vmem_to_hbm [thread:$0]  (%p2565_p9), %s2415_s28, 512, %s2423_s26, %s2427_s18, %s2570_s4, %s2570_s4, %s2569_s0  }
 0x221 PF: > { %p1483_p7 = scmp.ge.s32.totalorder %s1934_s16, 2  ;;  %s971_s27 = sand.u32 1, %s1906_s30  }
 0x222   : > { %p2571_p11 = scmp.ne.s32.totalorder %s2552_s19, 0  ;;  %s972_s13 = scalar_lea.sflag [#allocation4], %s971_s27 }
 0x224   : > { %p1461_p6 = pnand %p1483_p7, %p2571_p11 }
 0x226   : > { %1897 = dma.done.wait (!%p1461_p6), %s972_s13, 512  }
 0x227   : > { %1899 = vsyncadd (!%p1461_p6), %s972_s13, 4294966784  ;;  %s2572_s1 = sadd.s32 4294967294, %s1934_s16  }
 0x228   : > { %s980_s17 = sand.u32 1, %s2572_s1  }
 0x229   : > { %s981_s24 = scalar_lea.sflag [#allocation16], %s980_s17 }
 0x22a   : > { %1901 = dma.done.wait (!%p1461_p6), %s981_s24, 1024  }
 0x22b   : > { %1903 = vsyncadd (!%p1461_p6), %s981_s24, 4294966272  ;;  %s32_s16 = sadd.s32 1, %s1934_s16   ;;  %s2573_s30 = smov %s1910_s10 }
 0x22c   : > { %p29_p9 = scmp.ge.s32.totalorder %s32_s16, 6   ;;  %s2574_s10 = smov %s1914_s11 }
 0x22d   : > { %s2575_s11 = smov %s2243_s29  ;;  %s2576_s12 = smov %s1926_s14 }
 0x22e   : > { %s2577_s13 = smov %s1930_s15  ;;  %s2578_s14 = smov %s2581_s23 }
 0x22f   : > { %s2579_s15 = smov %s2585_s21  ;;  %31 = sbr.rel (!%p29_p9) target bundleno = 21 (0x15), region = 149 }
 0x236   :  { %995 = vsyncpa [#allocation3], 1 }
 0x237   :  { %997 = vsyncpa [#allocation3 + $0x1], 1 }
 0x238   :  { %998 = vsyncpa [#allocation6], 1 }
 0x239   :  { %999 = vsyncpa [#allocation9], 1 }
 0x23a   :  { %1000 = vsyncpa [#allocation12], 1 }
 0x23b   :  { %1001 = vsyncpa [#allocation4], 1 }
 0x23c   :  { %1003 = vsyncpa [#allocation4 + $0x1], 1 }
 0x23d   :  { %1004 = vsyncpa [#allocation16], 1 }
 0x23e   :  { %1006 = vsyncpa [#allocation16 + $0x1], 1 }

</bundles_post_ra>
